<compile_context>
chip_gen: v5e
topology: v5e:2x2
jax: 0.10.0
libtpu: 0.0.40
codegen_flags: <defaults>
</compile_context>

<pallas_src>
import jax
import jax.numpy as jnp
from jax.experimental import pallas as pl
from jax.experimental.pallas import tpu as pltpu


def _round_up(x, m):
    return (x + m - 1) // m * m


def _embed_dropout_kernel(ids_ref, table_ref, mask_ref, out_ref):
    """One grid step: gather `tokens_per_block` embedding rows via a one-hot
    MXU matmul, apply the pre-scaled dropout keep-mask, single fused store."""
    ids = ids_ref[...]                                        # (tpb, 1) int32
    tpb = out_ref.shape[0]
    vocab = table_ref.shape[0]
    token_iota = jax.lax.broadcasted_iota(jnp.int32, (tpb, vocab), 1)
    onehot = (token_iota == ids).astype(table_ref.dtype)      # (tpb, V)
    gathered = jnp.dot(onehot, table_ref[...],
                       preferred_element_type=jnp.float32)    # (tpb, Ep)
    out_ref[...] = (gathered * mask_ref[...]).astype(out_ref.dtype)


def slu_embeddings_forward(ids, table, *, dropout_key=None, dropout_p=0.5,
                           training=True, tokens_per_block=256):
    """ids: (B, S) int token indices; table: (V, E) embedding weights.
    Returns (B, S, E) = Dropout(p)(Embedding(ids)), matching SLUEmbeddings."""
    B, S = ids.shape
    V, E = table.shape
    N = B * S
    out_dtype = table.dtype

    # Lane-dense output: pad embedding dim to a multiple of 128 lanes.
    Ep = _round_up(E, 128)
    # Large token blocks amortize per-grid-step overhead; keep a multiple of 8
    # (sublane granularity) and clamp for tiny inputs.
    tpb = _round_up(min(tokens_per_block, _round_up(N, 8)), 8)
    N_pad = _round_up(N, tpb)
    num_blocks = N_pad // tpb

    ids_col = jnp.pad(ids.reshape(N).astype(jnp.int32),
                      (0, N_pad - N)).reshape(N_pad, 1)
    table_p = table if Ep == E else jnp.pad(table, ((0, 0), (0, Ep - E)))

    # Pre-scaled inverted-dropout keep-mask. Identity in eval mode / p == 0,
    # all-zero for p >= 1 (matches torch).
    if (not training) or dropout_p == 0.0:
        mask = jnp.ones((N_pad, Ep), out_dtype)
    elif dropout_p >= 1.0:
        mask = jnp.zeros((N_pad, Ep), out_dtype)
    else:
        keep_prob = 1.0 - float(dropout_p)
        if dropout_key is None:
            dropout_key = jax.random.PRNGKey(0)
        keep = jax.random.bernoulli(dropout_key, p=keep_prob, shape=(N_pad, Ep))
        mask = keep.astype(out_dtype) * jnp.asarray(1.0 / keep_prob, out_dtype)

    # VMEM budget: resident table + double-buffered ids/mask/out blocks (+2x slack).
    itemsize = jnp.dtype(out_dtype).itemsize
    block_bytes = tpb * Ep * itemsize
    table_bytes = V * Ep * itemsize
    ids_block_bytes = tpb * 128 * 4            # lane-padded int32 column
    need = 2 * table_bytes + 2 * ids_block_bytes + 4 * block_bytes
    vmem_limit = int(min(100 * 2 ** 20, max(8 * 2 ** 20, 2 * need)))

    out = pl.pallas_call(
        _embed_dropout_kernel,
        out_shape=jax.ShapeDtypeStruct((N_pad, Ep), out_dtype),
        grid=(num_blocks,),
        in_specs=[
            # (tpb, 1) block of token ids for this grid step.
            pl.BlockSpec((tpb, 1), lambda i: (i, 0)),
            # Full embedding table, resident in VMEM (constant index map).
            # TODO(synk): for large vocabularies (V * Ep * 4B > VMEM, esp.
            # v7x's 64 MiB) stream only the touched rows from HBM via
            # memory_space=pl.ANY + manual make_async_copy double-buffering.
            pl.BlockSpec((V, Ep), lambda i: (0, 0)),
            # Pre-scaled dropout keep-mask, tiled like the output.
            pl.BlockSpec((tpb, Ep), lambda i: (i, 0)),
        ],
        out_specs=pl.BlockSpec((tpb, Ep), lambda i: (i, 0)),
        compiler_params=pltpu.CompilerParams(
            dimension_semantics=("parallel",),   # distinct output block per step
            vmem_limit_bytes=vmem_limit,
        ),
    )(ids_col, table_p, mask)

    return out[:N, :E].reshape(B, S, E)


if __name__ == "__main__":
    # Small deterministic config consistent with the module:
    # nn.Embedding(vocab=32, emb_size=32), dropout p=0.5, input ids (B=2, S=8).
    vocab, emb_size = 32, 32
    B, S = 2, 8
    dropout_p = 0.5

    key = jax.random.PRNGKey(0)
    k_w, k_ids, k_drop = jax.random.split(key, 3)
    embed_weight = jax.random.normal(k_w, (vocab, emb_size), dtype=jnp.float32)
    x = jax.random.randint(k_ids, (B, S), 0, vocab, dtype=jnp.int32)

    # Training-mode forward (dropout active), matching the torch module default.
    out = slu_embeddings_forward(x, embed_weight, dropout_key=k_drop,
                                 dropout_p=dropout_p, training=True)
    out = jax.block_until_ready(out)
    assert out.shape == (B, S, emb_size)
    assert out.dtype == jnp.float32

    # Every output element is either dropped (0) or the embedding row scaled
    # by 1 / keep_prob.
    ref = embed_weight[x]                                    # (B, S, E)
    scaled = ref / (1.0 - dropout_p)
    ok = jnp.logical_or(jnp.isclose(out, 0.0, atol=1e-6),
                        jnp.isclose(out, scaled, rtol=1e-5, atol=1e-5))
    assert bool(jnp.all(ok))

    # Eval-mode / p == 0 path: dropout is the identity.
    out_eval = slu_embeddings_forward(x, embed_weight, dropout_p=dropout_p,
                                      training=False)
    out_eval = jax.block_until_ready(out_eval)
    assert jnp.allclose(out_eval, ref, rtol=1e-6, atol=1e-6)

    print("KERNEL_OK")
</pallas_src>

<mosaic_0001>
module attributes {stable_mosaic.version = 11 : i64} {
  func.func @_embed_dropout_kernel(%arg0: i32, %arg1: memref<16x1xi32, #tpu.memory_space<vmem>>, %arg2: memref<32x128xf32, #tpu.memory_space<vmem>>, %arg3: memref<16x128xf32, #tpu.memory_space<vmem>>, %arg4: memref<16x128xf32, #tpu.memory_space<vmem>>) attributes {dimension_semantics = [#tpu.dimension_semantics<parallel>], iteration_bounds = array<i64: 1>, scalar_prefetch = 0 : i64, scratch_operands = 0 : i64, tpu.core_type = #tpu.core_type<tc>, window_params = [{transform_indices = @transform_0, window_bounds = array<i64: 16, 1>}, {pipeline_mode = #tpu.pipeline_mode<synchronous>, transform_indices = @transform_1, window_bounds = array<i64: 32, 128>}, {transform_indices = @transform_2, window_bounds = array<i64: 16, 128>}, {transform_indices = @transform_3, window_bounds = array<i64: 16, 128>}]} {
    %c0 = arith.constant 0 : index
    %c0_0 = arith.constant 0 : index
    %0 = vector.load %arg1[%c0, %c0_0] : memref<16x1xi32, #tpu.memory_space<vmem>>, vector<16x1xi32>
    %1 = tpu.iota {dimensions = array<i32: 1>} : vector<16x32xi32>
    %2 = vector.broadcast %0 : vector<16x1xi32> to vector<16x32xi32>
    %3 = arith.cmpi eq, %1, %2 : vector<16x32xi32>
    %4 = arith.extui %3 : vector<16x32xi1> to vector<16x32xi32>
    %5 = arith.sitofp %4 : vector<16x32xi32> to vector<16x32xf32>
    %c0_1 = arith.constant 0 : index
    %c0_2 = arith.constant 0 : index
    %6 = vector.load %arg2[%c0_1, %c0_2] : memref<32x128xf32, #tpu.memory_space<vmem>>, vector<32x128xf32>
    %cst = arith.constant dense<0.000000e+00> : vector<16x128xf32>
    %7 = tpu.matmul %5, %6, %cst {dimension_numbers = #tpu.dot_dimension_numbers<[1], [0], [0], [1], [0, 0, 1, 1], [], []>} : vector<16x32xf32>, vector<32x128xf32>, vector<16x128xf32> -> vector<16x128xf32>
    %c0_3 = arith.constant 0 : index
    %c0_4 = arith.constant 0 : index
    %8 = vector.load %arg3[%c0_3, %c0_4] : memref<16x128xf32, #tpu.memory_space<vmem>>, vector<16x128xf32>
    %9 = arith.mulf %7, %8 : vector<16x128xf32>
    %c0_5 = arith.constant 0 : index
    %c0_6 = arith.constant 0 : index
    %10 = vector.load %arg4[%c0_5, %c0_6] : memref<16x128xf32, #tpu.memory_space<vmem>>, vector<16x128xf32>
    tpu.vector_store %arg4[%c0_5, %c0_6], %9 {strides = array<i32>} : memref<16x128xf32, #tpu.memory_space<vmem>>, vector<16x128xf32>,
    return
  }
  func.func @transform_0(%arg0: i32) -> (i32, i32) {
    %c0_i32 = arith.constant 0 : i32
    %c0_i32_0 = arith.constant 0 : i32
    return %arg0, %c0_i32 : i32, i32
  }
  func.func @transform_1(%arg0: i32) -> (i32, i32) {
    %c0_i32 = arith.constant 0 : i32
    %c0_i32_0 = arith.constant 0 : i32
    %c0_i32_1 = arith.constant 0 : i32
    return %c0_i32, %c0_i32_0 : i32, i32
  }
  func.func @transform_2(%arg0: i32) -> (i32, i32) {
    %c0_i32 = arith.constant 0 : i32
    %c0_i32_0 = arith.constant 0 : i32
    return %arg0, %c0_i32 : i32, i32
  }
  func.func @transform_3(%arg0: i32) -> (i32, i32) {
    %c0_i32 = arith.constant 0 : i32
    %c0_i32_0 = arith.constant 0 : i32
    return %arg0, %c0_i32 : i32, i32
  }
}

</mosaic_0001>

<bundles_post_ra>
// kernel: tpu_custom_call.1
= control target key start
LH: loop header
LB: loop body
LE: loop exit
PB: predicated region body
PF: predicated region fallthrough
CT: control target
= control target key end

     0   :  { %8 = vsyncpa [#allocation3], 0  ;;  %s223_s0 = inlined_call_operand.vmem [shape: s32[16,1], index: 0, kind: input, shape index: {}]   ;;  %s224_s1 = inlined_call_operand.hbm [shape: f32[32,128], index: 1, kind: input, shape index: {}]   ;;  %s225_s2 = inlined_call_operand.vmem [shape: f32[16,128], index: 2, kind: input, shape index: {}]   ;;  %s226_s3 = inlined_call_operand.hbm [shape: f32[16,128], index: 3, kind: output, shape index: {}]  }
   0x1   :  { %9 = vsyncpa [#allocation4], 0  ;;  %s16_s14 = sshll.u32 %s224_s1, 4  ;;  %s173_s15 = smov [#allocation2]   ;;  %s17_s14 = int_to_ptr.hbm [resolvable:$true] %s16_s14 }
   0x2   :  { %s18_s16 = sshll.u32 %s173_s15, 4  ;;  %s174_s17 = smov 128   ;;  %s19_s16 = int_to_ptr.vmem [resolvable:$true] %s18_s16 }
   0x3   :  { %s175_s18 = smov 8  }
   0x4   :  { %24 = dma.hbm_to_vmem [thread:$0]  %s17_s14, 512, %s19_s16, [#allocation3], %s174_s17, %s174_s17, %s175_s18  }
   0x5   :  { %169 = dma.done.wait [#allocation3], 512  }
   0x6   :  { %170 = vsyncadd [#allocation3], 4294966784  ;;  %v176_v0 = vmov 0   ;;  %v31_v1 = vld [vmem:[%s223_s0] sm:$0xff]  ;;  %v50_v2 = vld [vmem:[#allocation2 + $0x18] sm:$0xff]  ;;  %v33_v7 = vlaneseq  ;;  %vm51_vm0 = vcmask 261120  }
   0x7   :  { %120 = vset.pattern.permute.xlu0 %v176_v0  ;;  %70 = vmatpush.msra.mxu0 %v50_v2  ;;  %v49_v3 = vld [vmem:[#allocation2 + $0x10] sm:$0xff]  ;;  %v48_v4 = vld [vmem:[#allocation2 + $0x8] sm:$0xff]  ;;  %v47_v6 = vld [vmem:[#allocation2] sm:$0xff]  ;;  %v177_v10 = vmov 0.0   ;;  %s178_s25 = smov [#allocation5]   ;;  %s93_s29 = sshll.u32 %s226_s3, 4  ;;  %s94_s29 = int_to_ptr.hbm [resolvable:$true] %s93_s29 }
   0x8   :  { %36 = vperm.xlu0 %120, %v31_v1   ;;  %110 = vmatpush.msra.mxu1 %v50_v2  ;;  %v32_v5 = vld [vmem:[%s223_s0 + $0x8] sm:$0xff]  ;;  %v34_v8 = vand.u32 127, %v33_v7  ;;  %v81_v14 = vld [vmem:[%s225_s2] sm:$0xff]  ;;  %s91_s26 = sshll.u32 %s178_s25, 4  ;;  %s92_s26 = int_to_ptr.vmem [resolvable:$true] %s91_s26 }
   0x9   :  { %71 = vmatpush.msra.mxu0 %v49_v3  ;;  %v82_v17 = vld [vmem:[%s225_s2 + $0x8] sm:$0xff] }
   0xa   :  { %111 = vmatpush.msra.mxu1 %v49_v3 }
   0xb   :  { %72 = vmatpush.msra.mxu0 %v48_v4 }
   0xc   :  { %112 = vmatpush.msra.mxu1 %v48_v4 }
   0xd   :  { %73 = vmatpush.msra.mxu0 %v47_v6 }
   0xe   :  { %113 = vmatpush.msra.mxu1 %v47_v6 }
  0x10   :  { %39 = vperm.xlu0 %120, %v32_v5  }
  0x7a   :  { %v37_v9 = vpop.permute.xlu0 %36 }
  0x7b   :  { %vm41_vm1 = vcmp.eq.s32.totalorder %v34_v8, %v37_v9 }
  0x7c   :  { %v106_v11 = vsel %vm41_vm1, 1.0, %v177_v10 }
  0x7d   :  { %108 = vmatmul.msk.f32.vlgmr.msra.gmra.mxu0 %vm51_vm0, %v106_v11 }
  0x82   :  { %v40_v12 = vpop.permute.xlu0 %39 }
  0x83   :  { %vm42_vm2 = vcmp.eq.s32.totalorder %v34_v8, %v40_v12 }
  0x84   :  { %v107_v13 = vsel %vm42_vm2, 1.0, %v177_v10 }
  0x85   :  { %109 = vmatmul.msk.f32.vlgmr.msra.gmra.mxu1 %vm51_vm0, %v107_v13 }
  0xfa   :  { %v75_v15 = vpop.f32.mrf.mxu0 }
  0xfb   :  { %v83_v16 = vmul.f32 %v81_v14, %v75_v15 }
  0xfd   :  { %85 = vst [vmem:[#allocation5] sm:$0xff] %v83_v16 }
 0x102   :  { %v78_v18 = vpop.f32.mrf.mxu1 }
 0x103   :  { %v84_v19 = vmul.f32 %v82_v17, %v78_v18 }
 0x105   :  { %86 = vst [vmem:[#allocation5 + $0x8] sm:$0xff] %v84_v19 }
 0x106   :  { %99 = dma.vmem_to_hbm [thread:$0]  %s92_s26, 256, %s94_s29, [#allocation4], %s174_s17, %s174_s17, %s175_s18  }
 0x107   :  { %171 = dma.done.wait [#allocation4], 256  }
 0x108   :  { %172 = vsyncadd [#allocation4], 4294967040 }
 0x109   :  { %104 = vsyncpa [#allocation3], 1 }
 0x10a   :  { %105 = vsyncpa [#allocation4], 1 }

</bundles_post_ra>
